<compile_context>
chip_gen: v7x
topology: tpu7x:2x2x1
jax: 0.10.0
libtpu: 0.0.40
codegen_flags: <defaults>
</compile_context>

<pallas_src>
import jax
import jax.numpy as jnp
from jax.experimental import pallas as pl
from jax.experimental.pallas import tpu as pltpu

_ROW_ALIGN = 16        # row alignment for batch tiles (bf16 output: 16 sublanes)
_TARGET_TILE = 2048    # default rows per grid step (sweepable)


def _round_up(n, m):
    return ((n + m - 1) // m) * m


def _ceil_div(a, b):
    return -(-a // b)


# ----------------------------- Pallas kernel --------------------------------
def _mlp_kernel(x_ref, w1_ref, b1_ref, w2_ref, b2_ref, w3_ref, b3_ref, o_ref):
    # In-kernel cast of x to bf16 (avoids a separate wrapper-side cast pass).
    x = x_ref[...].astype(jnp.bfloat16)
    # Layer 1: bf16 matmul on the MXU, f32 accumulate; bias + ReLU in f32.
    h = jnp.dot(x, w1_ref[...], preferred_element_type=jnp.float32)
    h = jnp.maximum(h + b1_ref[...], 0.0)
    # Layer 2.
    h = jnp.dot(h.astype(jnp.bfloat16), w2_ref[...],
                preferred_element_type=jnp.float32)
    h = jnp.maximum(h + b2_ref[...], 0.0)
    # Layer 3: no activation; store as bf16 (o_ref dtype).
    out = jnp.dot(h.astype(jnp.bfloat16), w3_ref[...],
                  preferred_element_type=jnp.float32)
    o_ref[...] = (out + b3_ref[...]).astype(o_ref.dtype)


# ------------------------------ host wrapper ---------------------------------
def target_network_forward(x, params, *, block_b=None):
    """Fused forward pass of TargetNetwork.

    x: [B, in_dim] float32 (or bf16)
    params: dict with w1 [in,hid] bf16, b1 [1,hid] f32, w2 [hid,hid] bf16,
            b2 [1,hid] f32, w3 [hid,out] bf16, b3 [1,out] f32.
            Weights are stored transposed w.r.t. torch, so the kernel computes
            y = x @ W + b == x @ W_pt.T + b_pt.
    """
    B, in_dim = x.shape
    hid = params["w1"].shape[1]
    out_dim = params["w3"].shape[1]

    # ---- batch-tile selection -------------------------------------------------
    if block_b is None:
        # Aim for ~_TARGET_TILE rows per step, but keep >= 2 steps whenever B
        # is large enough so v7x's two TensorCores both get work.
        n_tiles = max(1, _ceil_div(B, _TARGET_TILE))
        if B >= 2 * _ROW_ALIGN:
            n_tiles = max(n_tiles, 2)
        block_b = _round_up(_ceil_div(B, n_tiles), _ROW_ALIGN)
    else:
        block_b = max(_ROW_ALIGN, _round_up(block_b, _ROW_ALIGN))
    n_tiles = _ceil_div(B, block_b)
    b_pad = n_tiles * block_b           # pad at most ~block_b-1 rows

    x_in = x
    if b_pad != B:
        x_in = jnp.pad(x_in, ((0, b_pad - B), (0, 0)))

    grid = (n_tiles,)

    # Weight/bias blocks: full array, constant block index -> Pallas keeps them
    # resident in VMEM across grid steps (no per-step re-DMA).
    def full_spec(shape):
        return pl.BlockSpec(shape, lambda i: (0,) * len(shape))

    out = pl.pallas_call(
        _mlp_kernel,
        # bf16 output: halves the dominant HBM write of this mem-bound kernel.
        out_shape=jax.ShapeDtypeStruct((b_pad, out_dim), jnp.bfloat16),
        grid_spec=pltpu.PrefetchScalarGridSpec(
            num_scalar_prefetch=0,
            grid=grid,
            in_specs=[
                pl.BlockSpec((block_b, in_dim), lambda i: (i, 0)),  # x tile
                full_spec((in_dim, hid)),    # w1 (bf16)
                full_spec((1, hid)),         # b1 (f32)
                full_spec((hid, hid)),       # w2 (bf16)
                full_spec((1, hid)),         # b2 (f32)
                full_spec((hid, out_dim)),   # w3 (bf16, unpadded)
                full_spec((1, out_dim)),     # b3 (f32, unpadded)
            ],
            out_specs=pl.BlockSpec((block_b, out_dim), lambda i: (i, 0)),
        ),
        compiler_params=pltpu.CompilerParams(
            # Batch tiles are independent -> megacore sharding on v7x.
            dimension_semantics=("parallel",),
        ),
    )(x_in, params["w1"], params["b1"], params["w2"], params["b2"],
      params["w3"], params["b3"])

    # Strip batch padding; present the result in the caller's dtype.
    return out[:B].astype(x.dtype)


# --------------------------- parameter init ----------------------------------
def _orthogonal(key, out_features, in_features):
    """Mimic torch.nn.init.orthogonal_(W, gain=1.0) for W of shape [out, in]."""
    rows, cols = out_features, in_features
    a = jax.random.normal(key, (max(rows, cols), min(rows, cols)), dtype=jnp.float32)
    q, r = jnp.linalg.qr(a)
    d = jnp.diag(r)
    # Sign correction (guard sign(0) -> use +1) so the decomposition is unique.
    q = q * jnp.where(d == 0, 1.0, jnp.sign(d))[None, :]
    if rows < cols:
        q = q.T
    return q  # shape [out_features, in_features], f32


def init_target_network_params(key, in_dim, out_dim, hid=128):
    """Frozen params: weights pre-cast to bf16 (used as-is every forward),
    biases kept f32 (added post-accumulation in f32)."""
    k1, k2, k3 = jax.random.split(key, 3)
    # torch Linear weight is [out, in]; store the transpose [in, out] so the
    # kernel computes x @ W (== x @ W_pt.T).
    w1 = _orthogonal(k1, hid, in_dim).T.astype(jnp.bfloat16)    # [in_dim, hid]
    w2 = _orthogonal(k2, hid, hid).T.astype(jnp.bfloat16)       # [hid, hid]
    w3 = _orthogonal(k3, out_dim, hid).T.astype(jnp.bfloat16)   # [hid, out_dim]
    return {
        "w1": w1, "b1": jnp.zeros((1, hid), jnp.float32),
        "w2": w2, "b2": jnp.zeros((1, hid), jnp.float32),
        "w3": w3, "b3": jnp.zeros((1, out_dim), jnp.float32),
    }


# ----------------------------- JAX reference ----------------------------------
def _reference_forward(x, params):
    """Pure-JAX reference with the same bf16-in / f32-accumulate / bf16-store
    numerics as the kernel."""
    h = jnp.dot(x.astype(jnp.bfloat16), params["w1"],
                preferred_element_type=jnp.float32)
    h = jnp.maximum(h + params["b1"], 0.0)
    h = jnp.dot(h.astype(jnp.bfloat16), params["w2"],
                preferred_element_type=jnp.float32)
    h = jnp.maximum(h + params["b2"], 0.0)
    y = jnp.dot(h.astype(jnp.bfloat16), params["w3"],
                preferred_element_type=jnp.float32)
    y = (y + params["b3"]).astype(jnp.bfloat16)   # match kernel's bf16 store
    return y.astype(x.dtype)


# -------------------------------- main ---------------------------------------
if __name__ == "__main__":
    key = jax.random.PRNGKey(0)
    k_params, k_x1, k_x2 = jax.random.split(key, 3)

    in_dim, hid, out_dim = 64, 128, 32
    params = init_target_network_params(k_params, in_dim, out_dim, hid=hid)

    # Case 1: even batch, default tile selection (>= 2 grid steps for v7x).
    B1 = 64
    x1 = jax.random.normal(k_x1, (B1, in_dim), dtype=jnp.float32)
    y1 = jax.block_until_ready(target_network_forward(x1, params))
    y1_ref = _reference_forward(x1, params)
    assert y1.shape == (B1, out_dim)
    assert jnp.allclose(y1, y1_ref, atol=2e-2, rtol=2e-2), "mismatch (even batch)"

    # Case 2: ragged batch + explicit small tile -> exercises batch padding
    # and a 4-step pipelined grid.
    B2 = 50
    x2 = jax.random.normal(k_x2, (B2, in_dim), dtype=jnp.float32)
    y2 = jax.block_until_ready(target_network_forward(x2, params, block_b=16))
    y2_ref = _reference_forward(x2, params)
    assert y2.shape == (B2, out_dim)
    assert jnp.allclose(y2, y2_ref, atol=2e-2, rtol=2e-2), "mismatch (ragged batch)"

    print("KERNEL_OK")
</pallas_src>

<mosaic_0001>
module attributes {stable_mosaic.version = 11 : i64} {
  func.func @_mlp_kernel(%arg0: i32, %arg1: memref<32x64xf32, #tpu.memory_space<vmem>>, %arg2: memref<64x128xbf16, #tpu.memory_space<vmem>>, %arg3: memref<1x128xf32, #tpu.memory_space<vmem>>, %arg4: memref<128x128xbf16, #tpu.memory_space<vmem>>, %arg5: memref<1x128xf32, #tpu.memory_space<vmem>>, %arg6: memref<128x32xbf16, #tpu.memory_space<vmem>>, %arg7: memref<1x32xf32, #tpu.memory_space<vmem>>, %arg8: memref<32x32xbf16, #tpu.memory_space<vmem>>) attributes {dimension_semantics = [#tpu.dimension_semantics<parallel>], iteration_bounds = array<i64: 2>, scalar_prefetch = 0 : i64, scratch_operands = 0 : i64, tpu.core_type = #tpu.core_type<tc>, window_params = [{transform_indices = @transform_0, window_bounds = array<i64: 32, 64>}, {pipeline_mode = #tpu.pipeline_mode<synchronous>, transform_indices = @transform_1, window_bounds = array<i64: 64, 128>}, {pipeline_mode = #tpu.pipeline_mode<synchronous>, transform_indices = @transform_2, window_bounds = array<i64: 1, 128>}, {pipeline_mode = #tpu.pipeline_mode<synchronous>, transform_indices = @transform_3, window_bounds = array<i64: 128, 128>}, {pipeline_mode = #tpu.pipeline_mode<synchronous>, transform_indices = @transform_4, window_bounds = array<i64: 1, 128>}, {pipeline_mode = #tpu.pipeline_mode<synchronous>, transform_indices = @transform_5, window_bounds = array<i64: 128, 32>}, {pipeline_mode = #tpu.pipeline_mode<synchronous>, transform_indices = @transform_6, window_bounds = array<i64: 1, 32>}, {transform_indices = @transform_7, window_bounds = array<i64: 32, 32>}]} {
    %c0 = arith.constant 0 : index
    %c0_0 = arith.constant 0 : index
    %0 = vector.load %arg1[%c0, %c0_0] : memref<32x64xf32, #tpu.memory_space<vmem>>, vector<32x64xf32>
    %1 = arith.truncf %0 : vector<32x64xf32> to vector<32x64xbf16>
    %c0_1 = arith.constant 0 : index
    %c0_2 = arith.constant 0 : index
    %2 = vector.load %arg2[%c0_1, %c0_2] : memref<64x128xbf16, #tpu.memory_space<vmem>>, vector<64x128xbf16>
    %cst = arith.constant dense<0.000000e+00> : vector<32x128xf32>
    %3 = tpu.matmul %1, %2, %cst {dimension_numbers = #tpu.dot_dimension_numbers<[1], [0], [0], [1], [0, 0, 1, 1], [], []>} : vector<32x64xbf16>, vector<64x128xbf16>, vector<32x128xf32> -> vector<32x128xf32>
    %c0_3 = arith.constant 0 : index
    %c0_4 = arith.constant 0 : index
    %4 = vector.load %arg3[%c0_3, %c0_4] : memref<1x128xf32, #tpu.memory_space<vmem>>, vector<1x128xf32>
    %5 = vector.broadcast %4 : vector<1x128xf32> to vector<32x128xf32>
    %6 = arith.addf %3, %5 : vector<32x128xf32>
    %cst_5 = arith.constant 0.000000e+00 : f32
    %7 = vector.broadcast %cst_5 : f32 to vector<32x128xf32>
    %8 = arith.maximumf %6, %7 : vector<32x128xf32>
    %9 = arith.truncf %8 : vector<32x128xf32> to vector<32x128xbf16>
    %c0_6 = arith.constant 0 : index
    %c0_7 = arith.constant 0 : index
    %10 = vector.load %arg4[%c0_6, %c0_7] : memref<128x128xbf16, #tpu.memory_space<vmem>>, vector<128x128xbf16>
    %cst_8 = arith.constant dense<0.000000e+00> : vector<32x128xf32>
    %11 = tpu.matmul %9, %10, %cst_8 {dimension_numbers = #tpu.dot_dimension_numbers<[1], [0], [0], [1], [0, 0, 1, 1], [], []>} : vector<32x128xbf16>, vector<128x128xbf16>, vector<32x128xf32> -> vector<32x128xf32>
    %c0_9 = arith.constant 0 : index
    %c0_10 = arith.constant 0 : index
    %12 = vector.load %arg5[%c0_9, %c0_10] : memref<1x128xf32, #tpu.memory_space<vmem>>, vector<1x128xf32>
    %13 = vector.broadcast %12 : vector<1x128xf32> to vector<32x128xf32>
    %14 = arith.addf %11, %13 : vector<32x128xf32>
    %cst_11 = arith.constant 0.000000e+00 : f32
    %15 = vector.broadcast %cst_11 : f32 to vector<32x128xf32>
    %16 = arith.maximumf %14, %15 : vector<32x128xf32>
    %17 = arith.truncf %16 : vector<32x128xf32> to vector<32x128xbf16>
    %c0_12 = arith.constant 0 : index
    %c0_13 = arith.constant 0 : index
    %18 = vector.load %arg6[%c0_12, %c0_13] : memref<128x32xbf16, #tpu.memory_space<vmem>>, vector<128x32xbf16>
    %cst_14 = arith.constant dense<0.000000e+00> : vector<32x32xf32>
    %19 = tpu.matmul %17, %18, %cst_14 {dimension_numbers = #tpu.dot_dimension_numbers<[1], [0], [0], [1], [0, 0, 1, 1], [], []>} : vector<32x128xbf16>, vector<128x32xbf16>, vector<32x32xf32> -> vector<32x32xf32>
    %c0_15 = arith.constant 0 : index
    %c0_16 = arith.constant 0 : index
    %20 = vector.load %arg7[%c0_15, %c0_16] : memref<1x32xf32, #tpu.memory_space<vmem>>, vector<1x32xf32>
    %21 = vector.broadcast %20 : vector<1x32xf32> to vector<32x32xf32>
    %22 = arith.addf %19, %21 : vector<32x32xf32>
    %23 = arith.truncf %22 : vector<32x32xf32> to vector<32x32xbf16>
    %c0_17 = arith.constant 0 : index
    %c0_18 = arith.constant 0 : index
    %24 = vector.load %arg8[%c0_17, %c0_18] : memref<32x32xbf16, #tpu.memory_space<vmem>>, vector<32x32xbf16>
    tpu.vector_store %arg8[%c0_17, %c0_18], %23 {strides = array<i32>} : memref<32x32xbf16, #tpu.memory_space<vmem>>, vector<32x32xbf16>,
    return
  }
  func.func @transform_0(%arg0: i32) -> (i32, i32) {
    %c0_i32 = arith.constant 0 : i32
    %c0_i32_0 = arith.constant 0 : i32
    return %arg0, %c0_i32 : i32, i32
  }
  func.func @transform_1(%arg0: i32) -> (i32, i32) {
    %c0_i32 = arith.constant 0 : i32
    %c0_i32_0 = arith.constant 0 : i32
    %c0_i32_1 = arith.constant 0 : i32
    return %c0_i32, %c0_i32_0 : i32, i32
  }
  func.func @transform_2(%arg0: i32) -> (i32, i32) {
    %c0_i32 = arith.constant 0 : i32
    %c0_i32_0 = arith.constant 0 : i32
    %c0_i32_1 = arith.constant 0 : i32
    return %c0_i32, %c0_i32_0 : i32, i32
  }
  func.func @transform_3(%arg0: i32) -> (i32, i32) {
    %c0_i32 = arith.constant 0 : i32
    %c0_i32_0 = arith.constant 0 : i32
    %c0_i32_1 = arith.constant 0 : i32
    return %c0_i32, %c0_i32_0 : i32, i32
  }
  func.func @transform_4(%arg0: i32) -> (i32, i32) {
    %c0_i32 = arith.constant 0 : i32
    %c0_i32_0 = arith.constant 0 : i32
    %c0_i32_1 = arith.constant 0 : i32
    return %c0_i32, %c0_i32_0 : i32, i32
  }
  func.func @transform_5(%arg0: i32) -> (i32, i32) {
    %c0_i32 = arith.constant 0 : i32
    %c0_i32_0 = arith.constant 0 : i32
    %c0_i32_1 = arith.constant 0 : i32
    return %c0_i32, %c0_i32_0 : i32, i32
  }
  func.func @transform_6(%arg0: i32) -> (i32, i32) {
    %c0_i32 = arith.constant 0 : i32
    %c0_i32_0 = arith.constant 0 : i32
    %c0_i32_1 = arith.constant 0 : i32
    return %c0_i32, %c0_i32_0 : i32, i32
  }
  func.func @transform_7(%arg0: i32) -> (i32, i32) {
    %c0_i32 = arith.constant 0 : i32
    %c0_i32_0 = arith.constant 0 : i32
    return %arg0, %c0_i32 : i32, i32
  }
}

</mosaic_0001>

<bundles_post_ra>
// kernel: tpu_custom_call.1
= control target key start
LH: loop header
LB: loop body
LE: loop exit
PB: predicated region body
PF: predicated region fallthrough
CT: control target
= control target key end

     0   :  { %12 = vsyncpa [#allocation3], 0  ;;  %s1193_s0 = inlined_call_operand.vmem [shape: f32[64,64], index: 0, kind: input, shape index: {}]   ;;  %s1194_s1 = inlined_call_operand.hbm [shape: bf16[64,128], index: 1, kind: input, shape index: {}]   ;;  %s1195_s2 = inlined_call_operand.vmem [shape: f32[1,128], index: 2, kind: input, shape index: {}]   ;;  %s1196_s3 = inlined_call_operand.hbm [shape: bf16[128,128], index: 3, kind: input, shape index: {}]   ;;  %s1197_s4 = inlined_call_operand.vmem [shape: f32[1,128], index: 4, kind: input, shape index: {}]   ;;  %s1198_s5 = inlined_call_operand.vmem [shape: bf16[128,32], index: 5, kind: input, shape index: {}]   ;;  %s1199_s6 = inlined_call_operand.vmem [shape: f32[1,32], index: 6, kind: input, shape index: {}]   ;;  %s1200_s7 = inlined_call_operand.vmem [shape: bf16[64,32], index: 7, kind: output, shape index: {}]  }
   0x1   :  { %13 = vsyncpa [#allocation5], 0  ;;  %s1058_s24 = smov 0  }
   0x2 LB: > { %s765_s25 = sadd.s32 4294967295, %s1012_s24   ;;  %p767_p0 = scmp.ge.s32.totalorder %s1012_s24, 1  ;;  %s1012_s24 = sphi %s1058_s24, %s19_s24  }
   0x3   : > { %p202_p1 = scmp.lt.s32.totalorder %s1012_s24, 3  ;;  %s1014_s26 = smov [#allocation2]  }
   0x4   : > { %s214_s27 = sshll.u32 %s1014_s26, 4  ;;  %p1072_p3 = scmp.eq.s32.totalorder %s765_s25, 0  ;;  %s215_s27 = int_to_ptr.vmem [resolvable:$true] %s214_s27 }
   0x5   : > { %p1066_p2 = pnand %p767_p0, %p202_p1  ;;  %s1015_s30 = smov [#allocation4]  }
   0x6   : > { %s1205_s29 = scalar_select %p1072_p3, 1, 0 }
   0x7   : > { %s1204_s28 = scalar_select %p1066_p2, 1, 0 }
   0x8   : > { %p899_p4 = pneg %p1066_p2  ;;  %s230_s8 = sshll.u32 %s1015_s30, 4  ;;  %s1084_s8 = int_to_ptr.vmem [resolvable:$true] %s230_s8 }
   0x9   : > { %s942_s12 = scalar_lea.hbm %s1194_s1, 512 }
   0xa   : > { %p1080_p5 = pnand %p1072_p3, %p899_p4  ;;  %p943_p6 = scmp.ne.s32.totalorder %s1194_s1, %s942_s12 }
   0xb   : > { %p949_p10 = scmp.lt.u32.totalorder %s942_s12, %s1194_s1 }
   0xc   : > { %p944_p7 = pneg %p1080_p5 }
   0xe   : > { %p945_p8 = pnand %p944_p7, %p943_p6 }
  0x10   : > { %p946_p9 = pneg %p945_p8 }
  0x12   : > { %p951_p11 = pnand %p949_p10, %p946_p9 }
  0x14   : > { %954 = shalt.err (!%p951_p11)
}
  0x15   : > { %s955_s17 = scalar_lea.vmem %s215_s27, 512  ;;  %p963_p1 = scmp.lt.s32.totalorder %s215_s27, %s215_s27 }
  0x16   : > { %p956_p12 = scmp.ne.s32.totalorder %s215_s27, %s955_s17  ;;  %p964_p4 = scmp.lt.s32.totalorder %s955_s17, %s955_s17 }
  0x18   : > { %p958_p13 = pnand %p956_p12, %p944_p7  ;;  %p965_p3 = por %p964_p4, %p963_p1 }
  0x1a   : > { %p959_p0 = pneg %p958_p13 }
  0x1c   : > { %p966_p2 = pnand %p965_p3, %p959_p0 }
  0x1e   : > { %969 = shalt.err (!%p966_p2)
}
  0x1f   : > { %s1016_s18 = smov 64   ;;  %s1017_s19 = smov 4  }
  0x20   : > { %902 = dma.hbm_to_vmem [thread:$0]  (!%p1080_p5), %s1194_s1, 512, %s215_s27, [#allocation3], %s1016_s18, %s1016_s18, %s1017_s19  }
  0x21   : > { %s970_s26 = scalar_lea.hbm %s1196_s3, 1024 }
  0x22   : > { %p971_p6 = scmp.ne.s32.totalorder %s1196_s3, %s970_s26  ;;  %p977_p8 = scmp.lt.u32.totalorder %s970_s26, %s1196_s3 }
  0x24   : > { %p973_p2 = pnand %p971_p6, %p944_p7 }
  0x26   : > { %p974_p3 = pneg %p973_p2 }
  0x28   : > { %p979_p9 = pnand %p977_p8, %p974_p3 }
  0x2a   : > { %982 = shalt.err (!%p979_p9)
}
  0x2b   : > { %s983_s27 = scalar_lea.vmem %s1084_s8, 1024  ;;  %p991_p13 = scmp.lt.s32.totalorder %s1084_s8, %s1084_s8 }
  0x2c   : > { %p984_p10 = scmp.ne.s32.totalorder %s1084_s8, %s983_s27  ;;  %p992_p0 = scmp.lt.s32.totalorder %s983_s27, %s983_s27 }
  0x2e   : > { %p986_p11 = pnand %p984_p10, %p944_p7  ;;  %p993_p1 = por %p992_p0, %p991_p13 }
  0x30   : > { %p987_p12 = pneg %p986_p11 }
  0x32   : > { %p994_p4 = pnand %p993_p1, %p987_p12 }
  0x34   : > { %997 = shalt.err (!%p994_p4)
}
  0x35   : > { %905 = dma.hbm_to_vmem [thread:$0]  (!%p1080_p5), %s1196_s3, 1024, %s1084_s8, [#allocation5], %s1016_s18, %s1016_s18, %s1017_s19  }
  0x36   : > { %p1207_p6 = scmp.ne.s32.totalorder %s1204_s28, 0 }
  0x37   : > { %p1208_p2 = scmp.ne.s32.totalorder (!%p1207_p6), %s1205_s29, 0 }
  0x38   : > { %264 = sbr.rel (%p1207_p6) target bundleno = 747 (0x2eb), region = 48 }
  0x3f   : > { %1003 = dma.done.wait (%p1208_p2), [#allocation3], 512  }
  0x40   : > { %1005 = vsyncadd (%p1208_p2), [#allocation3], 4294966784 }
  0x41   : > { %1007 = dma.done.wait (%p1208_p2), [#allocation5], 1024  }
  0x42   : > { %1009 = vsyncadd (%p1208_p2), [#allocation5], 4294966272  ;;  %s774_s9 = sshll.u32 %s765_s25, 2  ;;  %v922_v0 = vld [vmem:[#allocation2] sm:$0xff]   ;;  %v923_v1 = vld [vmem:[#allocation2 + $0x8] sm:$0xff]   ;;  %vm358_vm0 = vcmask 523264  }
  0x43   : > { %p301_p7 = scmp.lt.s32.totalorder %s774_s9, 7  ;;  %839 = vmatprep.subr.bf16.mxu0 %v922_v0  ;;  %v924_v2 = vld [vmem:[#allocation2 + $0x10] sm:$0xff]   ;;  %v926_v6 = vld [vmem:[#allocation4] sm:$0xff]   ;;  %v927_v7 = vld [vmem:[#allocation4 + $0x8] sm:$0xff]   ;;  %vm682_vm1 = vcmask 257024  }
  0x44   : > { %840 = vmatpush3.bf16.msra.mxu0 %v922_v0  ;;  %v925_v8 = vld [vmem:[#allocation2 + $0x18] sm:$0xff]   ;;  %851 = vmatprep.subr.bf16.mxu1 %v926_v6  ;;  %v928_v10 = vld [vmem:[#allocation4 + $0x10] sm:$0xff]   ;;  %v930_v14 = vld [vmem:[#allocation4 + $0x20] sm:$0xff]  }
  0x45   : > { %s1210_s9 = smov (!%p301_p7, %s774_s9), 7  ;;  %841 = vmatprep.subr.bf16.mxu0 %v923_v1  ;;  %852 = vmatpush3.bf16.msra.mxu1 %v926_v6  ;;  %v929_v12 = vld [vmem:[#allocation4 + $0x18] sm:$0xff]   ;;  %v931_v15 = vld [vmem:[#allocation4 + $0x28] sm:$0xff]   ;;  %v932_v16 = vld [vmem:[#allocation4 + $0x30] sm:$0xff]  }
  0x46   : > { %s775_s28 = sshll.u32 %s1210_s9, 3  ;;  %853 = vmatprep.subr.bf16.mxu1 %v927_v7  ;;  %v933_v17 = vld [vmem:[#allocation4 + $0x38] sm:$0xff]   ;;  %v934_v18 = vld [vmem:[%s1198_s5] sm:$0xff]   ;;  %v935_v19 = vld [vmem:[%s1198_s5 + $0x8] sm:$0xff]   ;;  %s777_s29 = sshll.u32 %s1210_s9, 2 }
  0x47   : > { %s304_s16 = scalar_lea.vmem %s1193_s0, %s775_s28  ;;  %v936_v20 = vld [vmem:[%s1198_s5 + $0x10] sm:$0xff]   ;;  %v937_v21 = vld [vmem:[%s1198_s5 + $0x18] sm:$0xff]   ;;  %v938_v22 = vld [vmem:[%s1198_s5 + $0x20] sm:$0xff]   ;;  %s310_s19 = scalar_lea.vmem %s1200_s7, %s777_s29 }
  0x48   : > { %v313_v3 = vld [vmem:[%s304_s16] sm:$0xff]  ;;  %v314_v4 = vld [vmem:[%s304_s16 + $0x8] sm:$0xff]  ;;  %842 = vmatpush3.bf16.msra.mxu0 %v923_v1  ;;  %v315_v9 = vld [vmem:[%s304_s16 + $0x10] sm:$0xff] }
  0x49   : > { %v317_v5 = vpack.c.bf16 %v314_v4, %v313_v3  ;;  %843 = vmatprep.subr.bf16.mxu0 %v924_v2  ;;  %v316_v11 = vld [vmem:[%s304_s16 + $0x18] sm:$0xff]  ;;  %854 = vmatpush3.bf16.msra.mxu1 %v927_v7  ;;  %v939_v23 = vld [vmem:[%s1198_s5 + $0x28] sm:$0xff]   ;;  %v778_v24 = vld [vmem:[%s1195_s2] ss:$0 sm:$0xff] }
  0x4a   : > { %v318_v13 = vpack.c.bf16 %v316_v11, %v315_v9  ;;  %855 = vmatprep.subr.bf16.mxu1 %v928_v10  ;;  %v940_v39 = vld [vmem:[%s1198_s5 + $0x30] sm:$0xff]   ;;  %v941_v40 = vld [vmem:[%s1198_s5 + $0x38] sm:$0xff]   ;;  %v785_v41 = vld [vmem:[%s1197_s4] ss:$0 sm:$0xff] }
  0x4b   : > { %847 = vmatprep.mubr.msk.bf16.mxu0 %vm358_vm0, %v317_v5  ;;  %v794_v56 = vld [vmem:[%s1199_s6] ss:$0 sm:$0xff] }
  0x4c   : > { %844 = vmatpush3.bf16.msra.mxu0 %v924_v2 }
  0x4d   : > { %845 = vmatprep.subr.bf16.mxu0 %v925_v8  ;;  %856 = vmatpush3.bf16.msra.mxu1 %v928_v10 }
  0x4e   : > { %857 = vmatprep.subr.bf16.mxu1 %v929_v12 }
  0x50   : > { %846 = vmatpush3.bf16.msra.mxu0 %v925_v8 }
  0x51   : > { %858 = vmatpush3.bf16.msra.mxu1 %v929_v12  ;;  %871 = vmatprep.subr.bf16.mxu0 %v934_v18 }
  0x52   : > { %859 = vmatprep.subr.bf16.mxu1 %v930_v14 }
  0x53   : > { %848 = vmatmul.mubr.msk.bf16.vlgmr.msra.gmra.mrb[0].mxu0 %vm358_vm0, %v318_v13 }
  0x54   : > { %872 = vmatpush3.bf16.msra.mxu0 %v934_v18 }
  0x55   : > { %860 = vmatpush3.bf16.msra.mxu1 %v930_v14  ;;  %873 = vmatprep.subr.bf16.mxu0 %v935_v19 }
  0x56   : > { %861 = vmatprep.subr.bf16.mxu1 %v931_v15 }
  0x58   : > { %874 = vmatpush3.bf16.msra.mxu0 %v935_v19 }
  0x59   : > { %862 = vmatpush3.bf16.msra.mxu1 %v931_v15  ;;  %875 = vmatprep.subr.bf16.mxu0 %v936_v20 }
  0x5a   : > { %863 = vmatprep.subr.bf16.mxu1 %v932_v16 }
  0x5c   : > { %876 = vmatpush3.bf16.msra.mxu0 %v936_v20 }
  0x5d   : > { %864 = vmatpush3.bf16.msra.mxu1 %v932_v16  ;;  %877 = vmatprep.subr.bf16.mxu0 %v937_v21 }
  0x5e   : > { %865 = vmatprep.subr.bf16.mxu1 %v933_v17 }
  0x60   : > { %878 = vmatpush3.bf16.msra.mxu0 %v937_v21 }
  0x61   : > { %866 = vmatpush3.bf16.msra.mxu1 %v933_v17  ;;  %879 = vmatprep.subr.bf16.mxu0 %v938_v22 }
  0x64   : > { %880 = vmatpush3.bf16.msra.mxu0 %v938_v22 }
  0x65   : > { %881 = vmatprep.subr.bf16.mxu0 %v939_v23 }
  0x68   : > { %882 = vmatpush3.bf16.msra.mxu0 %v939_v23 }
  0x69   : > { %883 = vmatprep.subr.bf16.mxu0 %v940_v39 }
  0x6c   : > { %884 = vmatpush3.bf16.msra.mxu0 %v940_v39 }
  0x6d   : > { %885 = vmatprep.subr.bf16.mxu0 %v941_v40 }
  0x70   : > { %886 = vmatpush3.bf16.msra.mxu0 %v941_v40 }
 0x126   : > { %v849_v25 = vpop.f32.mrb[0].mxu0 }
 0x127   : > { %v408_v26 = vadd.f32 %v849_v25, %v778_v24  ;;  %v399_v27 = vpop.f32.mrb[1].mxu0 }
 0x128   : > { %v400_v28 = vadd.f32 %v778_v24, %v399_v27  ;;  %v850_v29 = vpop.f32.mrb[2].mxu0 }
 0x129   : > { %v411_v30 = vadd.f32 %v850_v29, %v778_v24  ;;  %v402_v31 = vpop.f32.mrb[3].mxu0  ;;  %v416_v33 = vmax.f32 %v408_v26, 0.0 }
 0x12a   : > { %v403_v32 = vadd.f32 %v778_v24, %v402_v31  ;;  %v414_v35 = vmax.f32 %v400_v28, 0.0 }
 0x12b   : > { %v417_v34 = vmax.f32 %v411_v30, 0.0 }
 0x12c   : > { %v415_v36 = vmax.f32 %v403_v32, 0.0 }
 0x12d   : > { %v419_v37 = vpack.c.bf16 %v417_v34, %v416_v33 }
 0x12e   : > { %v418_v38 = vpack.c.bf16 %v415_v36, %v414_v35 }
 0x130   : > { %867 = vmatprep.mubr.bf16.mxu1 %v418_v38 }
 0x131   : > { %868 = vmatmul.mubr.bf16.vlgmr.msra.gmra.mrb[0].mxu1 %v419_v37 }
 0x204   : > { %v869_v42 = vpop.f32.mrb[0].mxu1 }
 0x205   : > { %v534_v43 = vadd.f32 %v869_v42, %v785_v41  ;;  %v525_v44 = vpop.f32.mrb[1].mxu1 }
 0x206   : > { %v526_v45 = vadd.f32 %v785_v41, %v525_v44  ;;  %v870_v46 = vpop.f32.mrb[2].mxu1 }
 0x207   : > { %v537_v47 = vadd.f32 %v870_v46, %v785_v41  ;;  %v528_v48 = vpop.f32.mrb[3].mxu1  ;;  %v542_v50 = vmax.f32 %v534_v43, 0.0 }
 0x208   : > { %v529_v49 = vadd.f32 %v785_v41, %v528_v48  ;;  %v540_v52 = vmax.f32 %v526_v45, 0.0 }
 0x209   : > { %v543_v51 = vmax.f32 %v537_v47, 0.0 }
 0x20a   : > { %v541_v53 = vmax.f32 %v529_v49, 0.0 }
 0x20b   : > { %v545_v54 = vpack.c.bf16 %v543_v51, %v542_v50 }
 0x20c   : > { %v544_v55 = vpack.c.bf16 %v541_v53, %v540_v52 }
 0x20e   : > { %887 = vmatprep.mubr.bf16.mxu0 %v544_v55 }
 0x20f   : > { %888 = vmatmul.mubr.bf16.vlgmr.msra.gmra.mrb[4].mxu0 %v545_v54 }
 0x2e2   : > { %v889_v57 = vpop.f32.mrb[4].mxu0 }
 0x2e3   : > { %v651_v58 = vpop.f32.mrb[5].mxu0  ;;  %v660_v61 = vadd.f32 %v889_v57, %v794_v56 }
 0x2e4   : > { %v652_v59 = vadd.f32 %v794_v56, %v651_v58  ;;  %v890_v60 = vpop.f32.mrb[6].mxu0 }
 0x2e5   : > { %v654_v62 = vpop.f32.mrb[7].mxu0  ;;  %v663_v0 = vadd.f32 %v890_v60, %v794_v56  ;;  %v811_v3 = vpack.c.bf16 %v660_v61, %v660_v61 }
 0x2e6   : > { %v809_v63 = vpack.c.bf16 %v652_v59, %v652_v59  ;;  %v655_v1 = vadd.f32 %v794_v56, %v654_v62 }
 0x2e7   : > { %v812_v4 = vpack.c.bf16 %v663_v0, %v663_v0  ;;  %685 = vst.msk [vmem:[%s310_s19 + $0x8] sm:$0xf] %vm682_vm1, %v811_v3 }
 0x2e8   : > { %683 = vst.msk [vmem:[%s310_s19] sm:$0xf] %vm682_vm1, %v809_v63  ;;  %v810_v2 = vpack.c.bf16 %v655_v1, %v655_v1 }
 0x2e9   : > { %686 = vst.msk [vmem:[%s310_s19 + $0xc] sm:$0xf] %vm682_vm1, %v812_v4 }
 0x2ea   : > { %684 = vst.msk [vmem:[%s310_s19 + $0x4] sm:$0xf] %vm682_vm1, %v810_v2 }
 0x2eb PF: > { %s19_s24 = sadd.s32 1, %s1012_s24  }
 0x2ec   : > { %p16_p5 = scmp.ge.s32.totalorder %s19_s24, 4  }
 0x2ee   :  { %18 = sbr.rel (!%p16_p5) target bundleno = 2 (0x2), region = 87 }
 0x2f5   :  { %709 = vsyncpa [#allocation3], 1 }
 0x2f6   :  { %711 = vsyncpa [#allocation3 + $0x1], 1 }
 0x2f7   :  { %712 = vsyncpa [#allocation5], 1 }

</bundles_post_ra>
